<compile_context>
chip_gen: v6e
topology: v6e:2x2x1
jax: 0.10.0
libtpu: 0.0.40
codegen_flags: <defaults>
</compile_context>

<pallas_src>
import functools

import jax
import jax.numpy as jnp
import numpy as np
from jax.experimental import pallas as pl
from jax.experimental.pallas import tpu as pltpu


def _yolo_kernel(stride, nc, anchor_wh, p_ref, grid_ref, io_ref, pp_ref, cm_ref):
    """One batch image; anchors folded into the block.

    p_ref   : (na, C, HW)   raw conv output, channel-major (HW lane-dense)
    grid_ref: (2, HW)       row 0 = grid x (col index), row 1 = grid y (row index)
    io_ref  : (na, HW, C)   decoded boxes (float32), final layout
    pp_ref  : (na, HW, C)   permuted raw predictions (input dtype), final layout
    cm_ref  : (C, HW) f32   VMEM scratch, channel-major staging of the decode
    """
    na = len(anchor_wh)
    g = grid_ref[...]                                   # (2, HW) f32

    for a in range(na):                                 # static unroll (na ~ 3)
        aw, ah = anchor_wh[a]                           # python float scalars
        xr = p_ref[a]                                   # (C, HW), input dtype

        # training-path tensor: raw values, transposed to (HW, C) in-kernel
        pp_ref[a] = jnp.transpose(xr, (1, 0))

        x = xr.astype(jnp.float32)
        # decode in channel-major layout so EUP/VPU work is lane-dense over HW
        cm_ref[0:2, :] = (jax.nn.sigmoid(x[0:2, :]) + g) * stride
        wh = jnp.exp(x[2:4, :])                         # exp only on wh rows
        cm_ref[2:3, :] = wh[0:1, :] * aw                # anchor_wh includes stride
        cm_ref[3:4, :] = wh[1:2, :] * ah
        cm_ref[4:, :] = jax.nn.sigmoid(x[4:, :])        # objectness + classes
        if nc == 1:                                     # static (trace-time) branch
            cm_ref[5:6, :] = jnp.ones_like(g[0:1, :])

        # one HBM-visible store per anchor, already in the final (HW, C) layout
        io_ref[a] = jnp.transpose(cm_ref[...], (1, 0))


def yolo_layer_forward(p, anchors, nc, img_size):
    """Inference-mode YOLOLayer.forward.

    p:       (bs, na*(nc+5), ny, nx) float (NCHW, as in PyTorch)
    anchors: (na, 2) float
    returns: (io, p_perm) with io: (bs, na*ny*nx, nc+5) float32
             and p_perm: (bs, na, ny, nx, nc+5) in p.dtype (training-path tensor)
    """
    bs, _, ny, nx = p.shape
    na = int(anchors.shape[0])
    C = nc + 5
    HW = ny * nx

    stride = float(max(img_size)) / float(max(ny, nx))
    # anchor_wh = (anchors / stride) * stride, baked in as compile-time scalars
    anchor_vec = (np.asarray(anchors, dtype=np.float32) /
                  np.float32(stride)).astype(np.float32)
    anchor_wh = tuple((float(w) * stride, float(h) * stride) for w, h in anchor_vec)

    # flattened grid over (ny, nx): row 0 = x (col index), row 1 = y (row index)
    ys, xs = jnp.meshgrid(jnp.arange(ny), jnp.arange(nx), indexing="ij")
    grid2 = jnp.stack([xs.reshape(-1), ys.reshape(-1)], axis=0).astype(jnp.float32)

    # (bs, na*C, ny, nx) -> (bs, na, C, HW): contiguous reshape, no HBM pass.
    p_r = p.reshape(bs, na, C, HW)

    # explicit VMEM budget (matters for production heads, not the toy shapes)
    itemsize = jnp.dtype(p.dtype).itemsize
    est_vmem = (2 * (na * C * HW * itemsize           # double-buffered input
                     + na * HW * C * 4                # double-buffered io out
                     + na * HW * C * itemsize         # double-buffered p_perm out
                     + 2 * HW * 4)                    # grid input
                + C * HW * 4                          # scratch
                + (2 << 20))                          # headroom
    cp_kwargs = {"dimension_semantics": ("parallel",)}
    if est_vmem > (16 << 20):
        cp_kwargs["vmem_limit_bytes"] = int(min(est_vmem, 96 << 20))

    io4, pp4 = pl.pallas_call(
        functools.partial(_yolo_kernel, stride, nc, anchor_wh),
        out_shape=(
            jax.ShapeDtypeStruct((bs, na, HW, C), jnp.float32),
            jax.ShapeDtypeStruct((bs, na, HW, C), p.dtype),
        ),
        grid=(bs,),
        in_specs=[
            pl.BlockSpec((None, na, C, HW), lambda b: (b, 0, 0, 0)),
            pl.BlockSpec((2, HW), lambda b: (0, 0)),
        ],
        out_specs=(
            pl.BlockSpec((None, na, HW, C), lambda b: (b, 0, 0, 0)),
            pl.BlockSpec((None, na, HW, C), lambda b: (b, 0, 0, 0)),
        ),
        scratch_shapes=[pltpu.VMEM((C, HW), jnp.float32)],
        compiler_params=pltpu.CompilerParams(**cp_kwargs),
    )(p_r, grid2)

    # both reshapes only merge/split adjacent contiguous dims -> no data movement
    io = io4.reshape(bs, na * HW, C)
    p_perm = pp4.reshape(bs, na, ny, nx, C)
    return io, p_perm


def _reference(p, anchors, nc, img_size):
    """Plain-JAX re-implementation of the PyTorch forward (inference, arc='normal')."""
    bs, _, ny, nx = p.shape
    na = anchors.shape[0]
    C = nc + 5
    stride = float(max(img_size)) / float(max(ny, nx))
    anchor_vec = anchors / stride
    p5 = jnp.transpose(p.reshape(bs, na, C, ny, nx), (0, 1, 3, 4, 2))
    ys, xs = jnp.meshgrid(jnp.arange(ny), jnp.arange(nx), indexing="ij")
    grid_xy = jnp.stack([xs, ys], axis=-1).astype(jnp.float32)[None, None]
    anchor_wh = anchor_vec.reshape(1, na, 1, 1, 2)
    xy = (jax.nn.sigmoid(p5[..., 0:2]) + grid_xy) * stride
    wh = jnp.exp(p5[..., 2:4]) * anchor_wh * stride
    rest = jax.nn.sigmoid(p5[..., 4:])
    io = jnp.concatenate([xy, wh, rest], axis=-1)
    if nc == 1:
        io = io.at[..., 5].set(1.0)
    return io.reshape(bs, -1, C), p5


if __name__ == "__main__":
    # config 1: multi-class head
    bs, nc, na = 2, 3, 3
    ny = nx = 16
    img_size = (128, 128)                              # -> stride = 8.0
    anchors = jnp.array([[10.0, 13.0], [16.0, 30.0], [33.0, 23.0]],
                        dtype=jnp.float32)

    key = jax.random.PRNGKey(0)
    p = 0.5 * jax.random.normal(key, (bs, na * (nc + 5), ny, nx),
                                dtype=jnp.float32)

    io, p_perm = yolo_layer_forward(p, anchors, nc, img_size)
    io = jax.block_until_ready(io)
    p_perm = jax.block_until_ready(p_perm)

    io_ref, p_perm_ref = _reference(p, anchors, nc, img_size)
    assert io.shape == (bs, na * ny * nx, nc + 5)
    assert p_perm.shape == (bs, na, ny, nx, nc + 5)
    assert jnp.allclose(io, io_ref, rtol=1e-4, atol=1e-4)
    assert jnp.allclose(p_perm, p_perm_ref, rtol=1e-5, atol=1e-5)

    # config 2: single-class head (exercises the in-kernel nc == 1 path)
    nc1 = 1
    p1 = 0.5 * jax.random.normal(jax.random.PRNGKey(1),
                                 (1, na * (nc1 + 5), ny, nx), dtype=jnp.float32)
    io1, pp1 = yolo_layer_forward(p1, anchors, nc1, img_size)
    io1 = jax.block_until_ready(io1)
    pp1 = jax.block_until_ready(pp1)
    io1_ref, pp1_ref = _reference(p1, anchors, nc1, img_size)
    assert jnp.allclose(io1, io1_ref, rtol=1e-4, atol=1e-4)
    assert jnp.allclose(pp1, pp1_ref, rtol=1e-5, atol=1e-5)

    print("KERNEL_OK")
</pallas_src>

<mosaic_0001>
module attributes {stable_mosaic.version = 11 : i64} {
  func.func @_yolo_kernel(%arg0: i32, %arg1: memref<1x3x8x256xf32, #tpu.memory_space<vmem>>, %arg2: memref<2x256xf32, #tpu.memory_space<vmem>>, %arg3: memref<1x3x256x8xf32, #tpu.memory_space<vmem>>, %arg4: memref<1x3x256x8xf32, #tpu.memory_space<vmem>>, %arg5: memref<8x256xf32, #tpu.memory_space<vmem>>) attributes {dimension_semantics = [#tpu.dimension_semantics<parallel>], iteration_bounds = array<i64: 2>, scalar_prefetch = 0 : i64, scratch_operands = 1 : i64, tpu.core_type = #tpu.core_type<tc>, window_params = [{transform_indices = @transform_0, window_bounds = array<i64: 1, 3, 8, 256>}, {pipeline_mode = #tpu.pipeline_mode<synchronous>, transform_indices = @transform_1, window_bounds = array<i64: 2, 256>}, {transform_indices = @transform_2, window_bounds = array<i64: 1, 3, 256, 8>}, {transform_indices = @transform_3, window_bounds = array<i64: 1, 3, 256, 8>}]} {
    %c0 = arith.constant 0 : index
    %c0_0 = arith.constant 0 : index
    %0 = vector.load %arg2[%c0, %c0_0] : memref<2x256xf32, #tpu.memory_space<vmem>>, vector<2x256xf32>
    %c0_1 = arith.constant 0 : index
    %c0_2 = arith.constant 0 : index
    %c0_3 = arith.constant 0 : index
    %c0_4 = arith.constant 0 : index
    %1 = vector.load %arg1[%c0_1, %c0_2, %c0_3, %c0_4] : memref<1x3x8x256xf32, #tpu.memory_space<vmem>>, vector<1x1x8x256xf32>
    %2 = vector.shape_cast %1 : vector<1x1x8x256xf32> to vector<8x256xf32>
    %3 = tpu.transpose %2, [1, 0] : vector<8x256xf32> -> vector<256x8xf32>
    %c0_5 = arith.constant 0 : index
    %c0_6 = arith.constant 0 : index
    %c0_7 = arith.constant 0 : index
    %c0_8 = arith.constant 0 : index
    %4 = vector.load %arg4[%c0_5, %c0_6, %c0_7, %c0_8] : memref<1x3x256x8xf32, #tpu.memory_space<vmem>>, vector<1x1x256x8xf32>
    %5 = vector.shape_cast %4 : vector<1x1x256x8xf32> to vector<256x8xf32>
    %6 = vector.shape_cast %3 : vector<256x8xf32> to vector<1x1x256x8xf32>
    tpu.vector_store %arg4[%c0_5, %c0_6, %c0_7, %c0_8], %6 {strides = array<i32>} : memref<1x3x256x8xf32, #tpu.memory_space<vmem>>, vector<1x1x256x8xf32>,
    %7 = vector.extract_strided_slice %2 {offsets = [0, 0], sizes = [2, 256], strides = [1, 1]} : vector<8x256xf32> to vector<2x256xf32>
    %8 = arith.negf %7 : vector<2x256xf32>
    %9 = math.exp %8 : vector<2x256xf32>
    %cst = arith.constant 1.000000e+00 : f32
    %10 = vector.broadcast %cst : f32 to vector<2x256xf32>
    %11 = arith.addf %10, %9 : vector<2x256xf32>
    %12 = arith.divf %10, %11 : vector<2x256xf32>
    %13 = arith.addf %12, %0 : vector<2x256xf32>
    %cst_9 = arith.constant 8.000000e+00 : f32
    %14 = vector.broadcast %cst_9 : f32 to vector<2x256xf32>
    %15 = arith.mulf %13, %14 : vector<2x256xf32>
    %c0_10 = arith.constant 0 : index
    %c0_11 = arith.constant 0 : index
    %16 = vector.load %arg5[%c0_10, %c0_11] : memref<8x256xf32, #tpu.memory_space<vmem>>, vector<2x256xf32>
    tpu.vector_store %arg5[%c0_10, %c0_11], %15 {strides = array<i32>} : memref<8x256xf32, #tpu.memory_space<vmem>>, vector<2x256xf32>,
    %17 = vector.extract_strided_slice %2 {offsets = [2, 0], sizes = [2, 256], strides = [1, 1]} : vector<8x256xf32> to vector<2x256xf32>
    %18 = math.exp %17 : vector<2x256xf32>
    %19 = vector.extract_strided_slice %18 {offsets = [0, 0], sizes = [1, 256], strides = [1, 1]} : vector<2x256xf32> to vector<1x256xf32>
    %cst_12 = arith.constant 1.000000e+01 : f32
    %20 = vector.broadcast %cst_12 : f32 to vector<1x256xf32>
    %21 = arith.mulf %19, %20 : vector<1x256xf32>
    %c2 = arith.constant 2 : index
    %c0_13 = arith.constant 0 : index
    %22 = vector.load %arg5[%c2, %c0_13] : memref<8x256xf32, #tpu.memory_space<vmem>>, vector<1x256xf32>
    tpu.vector_store %arg5[%c2, %c0_13], %21 {strides = array<i32>} : memref<8x256xf32, #tpu.memory_space<vmem>>, vector<1x256xf32>,
    %23 = vector.extract_strided_slice %18 {offsets = [1, 0], sizes = [1, 256], strides = [1, 1]} : vector<2x256xf32> to vector<1x256xf32>
    %cst_14 = arith.constant 1.300000e+01 : f32
    %24 = vector.broadcast %cst_14 : f32 to vector<1x256xf32>
    %25 = arith.mulf %23, %24 : vector<1x256xf32>
    %c3 = arith.constant 3 : index
    %c0_15 = arith.constant 0 : index
    %26 = vector.load %arg5[%c3, %c0_15] : memref<8x256xf32, #tpu.memory_space<vmem>>, vector<1x256xf32>
    tpu.vector_store %arg5[%c3, %c0_15], %25 {strides = array<i32>} : memref<8x256xf32, #tpu.memory_space<vmem>>, vector<1x256xf32>,
    %27 = vector.extract_strided_slice %2 {offsets = [4, 0], sizes = [4, 256], strides = [1, 1]} : vector<8x256xf32> to vector<4x256xf32>
    %28 = arith.negf %27 : vector<4x256xf32>
    %29 = math.exp %28 : vector<4x256xf32>
    %cst_16 = arith.constant 1.000000e+00 : f32
    %30 = vector.broadcast %cst_16 : f32 to vector<4x256xf32>
    %31 = arith.addf %30, %29 : vector<4x256xf32>
    %32 = arith.divf %30, %31 : vector<4x256xf32>
    %c4 = arith.constant 4 : index
    %c0_17 = arith.constant 0 : index
    %33 = vector.load %arg5[%c4, %c0_17] : memref<8x256xf32, #tpu.memory_space<vmem>>, vector<4x256xf32>
    tpu.vector_store %arg5[%c4, %c0_17], %32 {strides = array<i32>} : memref<8x256xf32, #tpu.memory_space<vmem>>, vector<4x256xf32>,
    %c0_18 = arith.constant 0 : index
    %c0_19 = arith.constant 0 : index
    %34 = vector.load %arg5[%c0_18, %c0_19] : memref<8x256xf32, #tpu.memory_space<vmem>>, vector<8x256xf32>
    %35 = tpu.transpose %34, [1, 0] : vector<8x256xf32> -> vector<256x8xf32>
    %c0_20 = arith.constant 0 : index
    %c0_21 = arith.constant 0 : index
    %c0_22 = arith.constant 0 : index
    %c0_23 = arith.constant 0 : index
    %36 = vector.load %arg3[%c0_20, %c0_21, %c0_22, %c0_23] : memref<1x3x256x8xf32, #tpu.memory_space<vmem>>, vector<1x1x256x8xf32>
    %37 = vector.shape_cast %36 : vector<1x1x256x8xf32> to vector<256x8xf32>
    %38 = vector.shape_cast %35 : vector<256x8xf32> to vector<1x1x256x8xf32>
    tpu.vector_store %arg3[%c0_20, %c0_21, %c0_22, %c0_23], %38 {strides = array<i32>} : memref<1x3x256x8xf32, #tpu.memory_space<vmem>>, vector<1x1x256x8xf32>,
    %c0_24 = arith.constant 0 : index
    %c1 = arith.constant 1 : index
    %c0_25 = arith.constant 0 : index
    %c0_26 = arith.constant 0 : index
    %39 = vector.load %arg1[%c0_24, %c1, %c0_25, %c0_26] : memref<1x3x8x256xf32, #tpu.memory_space<vmem>>, vector<1x1x8x256xf32>
    %40 = vector.shape_cast %39 : vector<1x1x8x256xf32> to vector<8x256xf32>
    %41 = tpu.transpose %40, [1, 0] : vector<8x256xf32> -> vector<256x8xf32>
    %c0_27 = arith.constant 0 : index
    %c1_28 = arith.constant 1 : index
    %c0_29 = arith.constant 0 : index
    %c0_30 = arith.constant 0 : index
    %42 = vector.load %arg4[%c0_27, %c1_28, %c0_29, %c0_30] : memref<1x3x256x8xf32, #tpu.memory_space<vmem>>, vector<1x1x256x8xf32>
    %43 = vector.shape_cast %42 : vector<1x1x256x8xf32> to vector<256x8xf32>
    %44 = vector.shape_cast %41 : vector<256x8xf32> to vector<1x1x256x8xf32>
    tpu.vector_store %arg4[%c0_27, %c1_28, %c0_29, %c0_30], %44 {strides = array<i32>} : memref<1x3x256x8xf32, #tpu.memory_space<vmem>>, vector<1x1x256x8xf32>,
    %45 = vector.extract_strided_slice %40 {offsets = [0, 0], sizes = [2, 256], strides = [1, 1]} : vector<8x256xf32> to vector<2x256xf32>
    %46 = arith.negf %45 : vector<2x256xf32>
    %47 = math.exp %46 : vector<2x256xf32>
    %cst_31 = arith.constant 1.000000e+00 : f32
    %48 = vector.broadcast %cst_31 : f32 to vector<2x256xf32>
    %49 = arith.addf %48, %47 : vector<2x256xf32>
    %50 = arith.divf %48, %49 : vector<2x256xf32>
    %51 = arith.addf %50, %0 : vector<2x256xf32>
    %cst_32 = arith.constant 8.000000e+00 : f32
    %52 = vector.broadcast %cst_32 : f32 to vector<2x256xf32>
    %53 = arith.mulf %51, %52 : vector<2x256xf32>
    %c0_33 = arith.constant 0 : index
    %c0_34 = arith.constant 0 : index
    %54 = vector.load %arg5[%c0_33, %c0_34] : memref<8x256xf32, #tpu.memory_space<vmem>>, vector<2x256xf32>
    tpu.vector_store %arg5[%c0_33, %c0_34], %53 {strides = array<i32>} : memref<8x256xf32, #tpu.memory_space<vmem>>, vector<2x256xf32>,
    %55 = vector.extract_strided_slice %40 {offsets = [2, 0], sizes = [2, 256], strides = [1, 1]} : vector<8x256xf32> to vector<2x256xf32>
    %56 = math.exp %55 : vector<2x256xf32>
    %57 = vector.extract_strided_slice %56 {offsets = [0, 0], sizes = [1, 256], strides = [1, 1]} : vector<2x256xf32> to vector<1x256xf32>
    %cst_35 = arith.constant 1.600000e+01 : f32
    %58 = vector.broadcast %cst_35 : f32 to vector<1x256xf32>
    %59 = arith.mulf %57, %58 : vector<1x256xf32>
    %c2_36 = arith.constant 2 : index
    %c0_37 = arith.constant 0 : index
    %60 = vector.load %arg5[%c2_36, %c0_37] : memref<8x256xf32, #tpu.memory_space<vmem>>, vector<1x256xf32>
    tpu.vector_store %arg5[%c2_36, %c0_37], %59 {strides = array<i32>} : memref<8x256xf32, #tpu.memory_space<vmem>>, vector<1x256xf32>,
    %61 = vector.extract_strided_slice %56 {offsets = [1, 0], sizes = [1, 256], strides = [1, 1]} : vector<2x256xf32> to vector<1x256xf32>
    %cst_38 = arith.constant 3.000000e+01 : f32
    %62 = vector.broadcast %cst_38 : f32 to vector<1x256xf32>
    %63 = arith.mulf %61, %62 : vector<1x256xf32>
    %c3_39 = arith.constant 3 : index
    %c0_40 = arith.constant 0 : index
    %64 = vector.load %arg5[%c3_39, %c0_40] : memref<8x256xf32, #tpu.memory_space<vmem>>, vector<1x256xf32>
    tpu.vector_store %arg5[%c3_39, %c0_40], %63 {strides = array<i32>} : memref<8x256xf32, #tpu.memory_space<vmem>>, vector<1x256xf32>,
    %65 = vector.extract_strided_slice %40 {offsets = [4, 0], sizes = [4, 256], strides = [1, 1]} : vector<8x256xf32> to vector<4x256xf32>
    %66 = arith.negf %65 : vector<4x256xf32>
    %67 = math.exp %66 : vector<4x256xf32>
    %cst_41 = arith.constant 1.000000e+00 : f32
    %68 = vector.broadcast %cst_41 : f32 to vector<4x256xf32>
    %69 = arith.addf %68, %67 : vector<4x256xf32>
    %70 = arith.divf %68, %69 : vector<4x256xf32>
    %c4_42 = arith.constant 4 : index
    %c0_43 = arith.constant 0 : index
    %71 = vector.load %arg5[%c4_42, %c0_43] : memref<8x256xf32, #tpu.memory_space<vmem>>, vector<4x256xf32>
    tpu.vector_store %arg5[%c4_42, %c0_43], %70 {strides = array<i32>} : memref<8x256xf32, #tpu.memory_space<vmem>>, vector<4x256xf32>,
    %c0_44 = arith.constant 0 : index
    %c0_45 = arith.constant 0 : index
    %72 = vector.load %arg5[%c0_44, %c0_45] : memref<8x256xf32, #tpu.memory_space<vmem>>, vector<8x256xf32>
    %73 = tpu.transpose %72, [1, 0] : vector<8x256xf32> -> vector<256x8xf32>
    %c0_46 = arith.constant 0 : index
    %c1_47 = arith.constant 1 : index
    %c0_48 = arith.constant 0 : index
    %c0_49 = arith.constant 0 : index
    %74 = vector.load %arg3[%c0_46, %c1_47, %c0_48, %c0_49] : memref<1x3x256x8xf32, #tpu.memory_space<vmem>>, vector<1x1x256x8xf32>
    %75 = vector.shape_cast %74 : vector<1x1x256x8xf32> to vector<256x8xf32>
    %76 = vector.shape_cast %73 : vector<256x8xf32> to vector<1x1x256x8xf32>
    tpu.vector_store %arg3[%c0_46, %c1_47, %c0_48, %c0_49], %76 {strides = array<i32>} : memref<1x3x256x8xf32, #tpu.memory_space<vmem>>, vector<1x1x256x8xf32>,
    %c0_50 = arith.constant 0 : index
    %c2_51 = arith.constant 2 : index
    %c0_52 = arith.constant 0 : index
    %c0_53 = arith.constant 0 : index
    %77 = vector.load %arg1[%c0_50, %c2_51, %c0_52, %c0_53] : memref<1x3x8x256xf32, #tpu.memory_space<vmem>>, vector<1x1x8x256xf32>
    %78 = vector.shape_cast %77 : vector<1x1x8x256xf32> to vector<8x256xf32>
    %79 = tpu.transpose %78, [1, 0] : vector<8x256xf32> -> vector<256x8xf32>
    %c0_54 = arith.constant 0 : index
    %c2_55 = arith.constant 2 : index
    %c0_56 = arith.constant 0 : index
    %c0_57 = arith.constant 0 : index
    %80 = vector.load %arg4[%c0_54, %c2_55, %c0_56, %c0_57] : memref<1x3x256x8xf32, #tpu.memory_space<vmem>>, vector<1x1x256x8xf32>
    %81 = vector.shape_cast %80 : vector<1x1x256x8xf32> to vector<256x8xf32>
    %82 = vector.shape_cast %79 : vector<256x8xf32> to vector<1x1x256x8xf32>
    tpu.vector_store %arg4[%c0_54, %c2_55, %c0_56, %c0_57], %82 {strides = array<i32>} : memref<1x3x256x8xf32, #tpu.memory_space<vmem>>, vector<1x1x256x8xf32>,
    %83 = vector.extract_strided_slice %78 {offsets = [0, 0], sizes = [2, 256], strides = [1, 1]} : vector<8x256xf32> to vector<2x256xf32>
    %84 = arith.negf %83 : vector<2x256xf32>
    %85 = math.exp %84 : vector<2x256xf32>
    %cst_58 = arith.constant 1.000000e+00 : f32
    %86 = vector.broadcast %cst_58 : f32 to vector<2x256xf32>
    %87 = arith.addf %86, %85 : vector<2x256xf32>
    %88 = arith.divf %86, %87 : vector<2x256xf32>
    %89 = arith.addf %88, %0 : vector<2x256xf32>
    %cst_59 = arith.constant 8.000000e+00 : f32
    %90 = vector.broadcast %cst_59 : f32 to vector<2x256xf32>
    %91 = arith.mulf %89, %90 : vector<2x256xf32>
    %c0_60 = arith.constant 0 : index
    %c0_61 = arith.constant 0 : index
    %92 = vector.load %arg5[%c0_60, %c0_61] : memref<8x256xf32, #tpu.memory_space<vmem>>, vector<2x256xf32>
    tpu.vector_store %arg5[%c0_60, %c0_61], %91 {strides = array<i32>} : memref<8x256xf32, #tpu.memory_space<vmem>>, vector<2x256xf32>,
    %93 = vector.extract_strided_slice %78 {offsets = [2, 0], sizes = [2, 256], strides = [1, 1]} : vector<8x256xf32> to vector<2x256xf32>
    %94 = math.exp %93 : vector<2x256xf32>
    %95 = vector.extract_strided_slice %94 {offsets = [0, 0], sizes = [1, 256], strides = [1, 1]} : vector<2x256xf32> to vector<1x256xf32>
    %cst_62 = arith.constant 3.300000e+01 : f32
    %96 = vector.broadcast %cst_62 : f32 to vector<1x256xf32>
    %97 = arith.mulf %95, %96 : vector<1x256xf32>
    %c2_63 = arith.constant 2 : index
    %c0_64 = arith.constant 0 : index
    %98 = vector.load %arg5[%c2_63, %c0_64] : memref<8x256xf32, #tpu.memory_space<vmem>>, vector<1x256xf32>
    tpu.vector_store %arg5[%c2_63, %c0_64], %97 {strides = array<i32>} : memref<8x256xf32, #tpu.memory_space<vmem>>, vector<1x256xf32>,
    %99 = vector.extract_strided_slice %94 {offsets = [1, 0], sizes = [1, 256], strides = [1, 1]} : vector<2x256xf32> to vector<1x256xf32>
    %cst_65 = arith.constant 2.300000e+01 : f32
    %100 = vector.broadcast %cst_65 : f32 to vector<1x256xf32>
    %101 = arith.mulf %99, %100 : vector<1x256xf32>
    %c3_66 = arith.constant 3 : index
    %c0_67 = arith.constant 0 : index
    %102 = vector.load %arg5[%c3_66, %c0_67] : memref<8x256xf32, #tpu.memory_space<vmem>>, vector<1x256xf32>
    tpu.vector_store %arg5[%c3_66, %c0_67], %101 {strides = array<i32>} : memref<8x256xf32, #tpu.memory_space<vmem>>, vector<1x256xf32>,
    %103 = vector.extract_strided_slice %78 {offsets = [4, 0], sizes = [4, 256], strides = [1, 1]} : vector<8x256xf32> to vector<4x256xf32>
    %104 = arith.negf %103 : vector<4x256xf32>
    %105 = math.exp %104 : vector<4x256xf32>
    %cst_68 = arith.constant 1.000000e+00 : f32
    %106 = vector.broadcast %cst_68 : f32 to vector<4x256xf32>
    %107 = arith.addf %106, %105 : vector<4x256xf32>
    %108 = arith.divf %106, %107 : vector<4x256xf32>
    %c4_69 = arith.constant 4 : index
    %c0_70 = arith.constant 0 : index
    %109 = vector.load %arg5[%c4_69, %c0_70] : memref<8x256xf32, #tpu.memory_space<vmem>>, vector<4x256xf32>
    tpu.vector_store %arg5[%c4_69, %c0_70], %108 {strides = array<i32>} : memref<8x256xf32, #tpu.memory_space<vmem>>, vector<4x256xf32>,
    %c0_71 = arith.constant 0 : index
    %c0_72 = arith.constant 0 : index
    %110 = vector.load %arg5[%c0_71, %c0_72] : memref<8x256xf32, #tpu.memory_space<vmem>>, vector<8x256xf32>
    %111 = tpu.transpose %110, [1, 0] : vector<8x256xf32> -> vector<256x8xf32>
    %c0_73 = arith.constant 0 : index
    %c2_74 = arith.constant 2 : index
    %c0_75 = arith.constant 0 : index
    %c0_76 = arith.constant 0 : index
    %112 = vector.load %arg3[%c0_73, %c2_74, %c0_75, %c0_76] : memref<1x3x256x8xf32, #tpu.memory_space<vmem>>, vector<1x1x256x8xf32>
    %113 = vector.shape_cast %112 : vector<1x1x256x8xf32> to vector<256x8xf32>
    %114 = vector.shape_cast %111 : vector<256x8xf32> to vector<1x1x256x8xf32>
    tpu.vector_store %arg3[%c0_73, %c2_74, %c0_75, %c0_76], %114 {strides = array<i32>} : memref<1x3x256x8xf32, #tpu.memory_space<vmem>>, vector<1x1x256x8xf32>,
    return
  }
  func.func @transform_0(%arg0: i32) -> (i32, i32, i32, i32) {
    %c0_i32 = arith.constant 0 : i32
    %c0_i32_0 = arith.constant 0 : i32
    %c0_i32_1 = arith.constant 0 : i32
    %c0_i32_2 = arith.constant 0 : i32
    return %arg0, %c0_i32, %c0_i32_0, %c0_i32_1 : i32, i32, i32, i32
  }
  func.func @transform_1(%arg0: i32) -> (i32, i32) {
    %c0_i32 = arith.constant 0 : i32
    %c0_i32_0 = arith.constant 0 : i32
    %c0_i32_1 = arith.constant 0 : i32
    return %c0_i32, %c0_i32_0 : i32, i32
  }
  func.func @transform_2(%arg0: i32) -> (i32, i32, i32, i32) {
    %c0_i32 = arith.constant 0 : i32
    %c0_i32_0 = arith.constant 0 : i32
    %c0_i32_1 = arith.constant 0 : i32
    %c0_i32_2 = arith.constant 0 : i32
    return %arg0, %c0_i32, %c0_i32_0, %c0_i32_1 : i32, i32, i32, i32
  }
  func.func @transform_3(%arg0: i32) -> (i32, i32, i32, i32) {
    %c0_i32 = arith.constant 0 : i32
    %c0_i32_0 = arith.constant 0 : i32
    %c0_i32_1 = arith.constant 0 : i32
    %c0_i32_2 = arith.constant 0 : i32
    return %arg0, %c0_i32, %c0_i32_0, %c0_i32_1 : i32, i32, i32, i32
  }
}

</mosaic_0001>

<bundles_post_ra>
// kernel: tpu_custom_call.1
= control target key start
LH: loop header
LB: loop body
LE: loop exit
PB: predicated region body
PF: predicated region fallthrough
CT: control target
= control target key end

     0   :  { %9 = vsyncpa [#allocation4], 0  ;;  %s2109_s0 = inlined_call_operand.hbm [shape: f32[2,3,8,256], index: 0, kind: input, shape index: {}]   ;;  %s2110_s1 = inlined_call_operand.hbm [shape: f32[2,256], index: 1, kind: input, shape index: {}]   ;;  %s2111_s2 = inlined_call_operand.vmem [shape: f32[2,3,256,8], index: 2, kind: output, shape index: {0}]   ;;  %s2112_s3 = inlined_call_operand.vmem [shape: f32[2,3,256,8], index: 3, kind: output, shape index: {1}]  }
   0x1   :  { %11 = vsyncpa [#allocation4 + $0x1], 0 }
   0x2   :  { %12 = vsyncpa [#allocation6], 0  ;;  %s1516_s12 = smov 0   ;;  %s1518_s13 = smov 0  }
   0x3   :  { %s1520_s14 = smov 0   ;;  %s1522_s15 = smov 0  }
   0x4 LB: > { %s1535_s16 = sadd.s32 4294967295, %s1489_s15   ;;  %s1538_s17 = sadd.s32 1, %s1489_s15   ;;  %s1489_s15 = sphi %s1522_s15, %s2130_s15   ;;  %s1485_s14 = sphi %s1520_s14, %s2129_s14   ;;  %s1481_s13 = sphi %s1518_s13, %s2128_s13   ;;  %s1477_s12 = sphi %s1516_s12, %s2127_s12  }
   0x5   : > { %s22_s18 = ssub.s32 %s1489_s15, %s1538_s17  ;;  %s25_s19 = sadd.s32 1, %s1485_s14 }
   0x6   : > { %p23_p0 = scmp.eq.s32.totalorder %s22_s18, 0  ;;  %p32_p1 = scmp.ne.s32.totalorder %s1485_s14, %s1481_s13 }
   0x7   : > { %p33_p2 = scmp.eq.s32.totalorder %s1489_s15, 0  ;;  %p38_p3 = scmp.ne.s32.totalorder %s1481_s13, %s1477_s12 }
   0x8   : > { %s1548_s20 = scalar_select %p23_p0, %s1485_s14, %s25_s19  }
   0x9   : > { %p1550_p4 = por %p33_p2, %p32_p1  ;;  %p2113_p5 = scmp.eq.s32.totalorder %s1535_s16, 0 }
   0xa   : > { %p1154_p6 = scmp.ge.s32.totalorder %s1489_s15, 1  ;;  %p122_p7 = scmp.lt.s32.totalorder %s1489_s15, 3 }
   0xb   : > { %p1559_p8 = por %p2113_p5, %p38_p3  ;;  %s1491_s24 = smov [#allocation5]  }
   0xc   : > { %p1563_p9 = pnand %p1154_p6, %p122_p7  ;;  %s135_s25 = sshll.u32 %s1491_s24, 4  ;;  %s136_s25 = int_to_ptr.vmem [resolvable:$true] %s135_s25 }
   0xd   : > { %s2117_s22 = scalar_select %p1559_p8, 1, 0 }
   0xe   : > { %s2118_s23 = scalar_select %p1563_p9, 1, 0 }
   0xf   : > { %p1313_p10 = pneg %p1563_p9  ;;  %p1322_p11 = scmp.lt.s32.totalorder %s1489_s15, 2 }
  0x10   : > { %s146_s26 = sand.u32 1, %s1485_s14   ;;  %s1304_s30 = smul.u32 768, %s1489_s15 }
  0x11   : > { %p1573_p12 = pnand %p1313_p10, %p2113_p5  ;;  %p1579_p13 = pnand %p1322_p11, %p1550_p4 }
  0x12   : > { %s1303_s29 = smul.u32 48, %s146_s26  ;;  %s1408_s4 = scalar_lea.vmem %s136_s25, 64 }
  0x13   : > { %p1399_p0 = pneg %p1573_p12  ;;  %p1409_p1 = scmp.ne.s32.totalorder %s136_s25, %s1408_s4 }
  0x14   : > { %p1416_p6 = scmp.lt.s32.totalorder %s136_s25, %s136_s25  ;;  %p1417_p7 = scmp.lt.s32.totalorder %s1408_s4, %s1408_s4 }
  0x15   : > { %p1411_p2 = pnand %p1409_p1, %p1399_p0 }
  0x16   : > { %p1418_p10 = por %p1417_p7, %p1416_p6 }
  0x17   : > { %p1412_p3 = pneg %p1411_p2 }
  0x19   : > { %p1419_p5 = pnand %p1418_p10, %p1412_p3 }
  0x1b   : > { %1422 = shalt.err (!%p1419_p5)
}
  0x1c   : > { %1316 = dma.hbm_to_vmem [thread:$0]  (!%p1573_p12), %s2110_s1, 64, %s136_s25, [#allocation6]  }
  0x1d   : > { %s1594_s9 = scalar_lea.hbm %s2109_s0, %s1304_s30  ;;  %s150_s10 = scalar_lea.vmem [#allocation3], %s1303_s29 }
  0x1e   : > { %s157_s11 = sshll.u32 %s150_s10, 4  ;;  %s1598_s12 = scalar_lea.sflag [#allocation4], %s146_s26  ;;  %s1596_s11 = int_to_ptr.vmem [resolvable:$true] %s157_s11 }
  0x1f   : > { %s1423_s15 = scalar_lea.hbm %s1594_s9, 768  ;;  %p1425_p5 = pneg %p1579_p13 }
  0x20   : > { %p1424_p4 = scmp.ne.s32.totalorder %s1594_s9, %s1423_s15  ;;  %s1428_s21 = scalar_lea.hbm %s2109_s0, 1536 }
  0x21   : > { %p1429_p0 = scmp.lt.s32.totalorder %s1594_s9, %s2109_s0  ;;  %p1430_p1 = scmp.lt.s32.totalorder %s1428_s21, %s1423_s15 }
  0x22   : > { %p1426_p11 = pnand %p1425_p5, %p1424_p4 }
  0x23   : > { %p1431_p2 = por %p1430_p1, %p1429_p0 }
  0x24   : > { %p1427_p12 = pneg %p1426_p11 }
  0x26   : > { %p1432_p3 = pnand %p1431_p2, %p1427_p12 }
  0x28   : > { %1435 = shalt.err (!%p1432_p3)
}
  0x29   : > { %s1436_s26 = scalar_lea.vmem %s1596_s11, 768  ;;  %s1492_s27 = smov [#allocation3]  }
  0x2a   : > { %p1437_p6 = scmp.ne.s32.totalorder %s1596_s11, %s1436_s26  ;;  %s1441_s29 = sshll.u32 %s1492_s27, 4  ;;  %s1442_s29 = int_to_ptr.vmem [resolvable:$false] %s1441_s29 }
  0x2b   : > { %s1443_s30 = scalar_lea.vmem %s1442_s29, 1536  ;;  %p1444_p4 = scmp.lt.s32.totalorder %s1596_s11, %s1442_s29 }
  0x2c   : > { %p1439_p7 = pnand %p1437_p6, %p1425_p5  ;;  %p1445_p11 = scmp.lt.s32.totalorder %s1443_s30, %s1436_s26 }
  0x2e   : > { %p1440_p10 = pneg %p1439_p7  ;;  %p1446_p8 = por %p1445_p11, %p1444_p4 }
  0x30   : > { %p1447_p9 = pnand %p1446_p8, %p1440_p10 }
  0x32   : > { %1450 = shalt.err (!%p1447_p9)
}
  0x33   : > { %s1493_s4 = smov 256   ;;  %s1494_s5 = smov 16  }
  0x34   : > { %1320 = dma.hbm_to_vmem [thread:$0]  (!%p1579_p13), %s1594_s9, 768, %s1596_s11, %s1598_s12, %s1493_s4, %s1493_s4, %s1494_s5  }
  0x35   : > { %p2121_p5 = scmp.ne.s32.totalorder %s2118_s23, 0 }
  0x36   : > { %s171_s6 = sand.u32 (!%p2121_p5), 1, %s1481_s13   ;;  %p2122_p8 = scmp.ne.s32.totalorder (!%p2121_p5), %s2117_s22, 0 }
  0x37   : > { %169 = sbr.rel (%p2121_p5) target bundleno = 617 (0x269), region = 28  ;;  %s172_s8 = scalar_lea.sflag (!%p2121_p5), [#allocation4], %s171_s6 }
  0x38   : > { %s1305_s7 = smul.u32 (!%p2121_p5), 48, %s171_s6 }
  0x3a   : > { %s1622_s10 = scalar_lea.vmem (!%p2121_p5), [#allocation3], %s1305_s7 }
  0x3c   : > { %1468 = dma.done.wait (%p2122_p8), %s172_s8, 768  }
  0x3d   : > { %1470 = vsyncadd (%p2122_p8), %s172_s8, 4294966528  ;;  %p2123_p9 = scmp.eq.s32.totalorder %s1535_s16, 0 }
  0x3f   : > { %1472 = dma.done.wait (%p2123_p9), [#allocation6], 64   ;;  %p2124_p13 = pmov %p2123_p9 }
  0x40   : > { %v218_v0 = vld [vmem:[%s1622_s10] sm:$0xff]  ;;  %v1634_v1 = vld [vmem:[%s1622_s10 + $0x8] sm:$0xff]  ;;  %v1495_v6 = vmov 1966171168   ;;  %v358_v8 = vlaneseq  ;;  %v1165_v40 = vld [vmem:[%s1622_s10 + $0x10] sm:$0xff]  ;;  %p207_p12 = scmp.lt.s32.totalorder %s1535_s16, 1 }
  0x41   : > { %1474 = vsyncadd (%p2124_p13), [#allocation6], 4294967232  ;;  %v1163_v2 = vmul.f32 -1.442695, %v1634_v1  ;;  %v348_v3 = vmul.f32 1.442695, %v1634_v1  ;;  %220 = vxpose.xlu0.b32.start.end [1/1] (short) %v218_v0, 128  ;;  %v356_v7 = vunpack.c.l.s4 %v1495_v6 }
  0x42   : > { %v1162_v4 = vmul.f32 -1.442695, %v218_v0  ;;  %v346_v5 = vmul.f32 1.442695, %v218_v0  ;;  %v359_v11 = vshrl.u32 %v358_v8, 7  ;;  %vm1643_vm0 = vcmp.lt.s32.totalorder %v358_v8, 256 }
  0x43   : > { %1361 = vpow2.f32 %v1163_v2  ;;  %v357_v10 = vunpack.c.0.s8 %v356_v7  ;;  %v1647_v29 = vld.sshfl [vmem:[#allocation5] sm:$0x33 pattern:$0x76325410]  ;;  %v1199_v41 = vmul.f32 -1.442695, %v1165_v40 }
  0x44   : > { %1363 = vpow2.f32 %v348_v3  ;;  %v1652_v32 = vcombine.high %v1647_v29, %v1647_v29  ;;  %v621_v42 = vmul.f32 1.442695, %v1165_v40  ;;  %v1662_v44 = vld [vmem:[%s1622_s10 + $0x18] sm:$0xff]  ;;  %s2132_s16 = smov (!%p207_p12, %s1535_s16), 1  ;;  %vm284_vm1 = vcmask 64512  }
  0x45   : > { %1365 = vpow2.f32 %v1162_v4  ;;  %v1638_v19 = vsub.s32 %v357_v10, %v359_v11  ;;  %v1200_v45 = vmul.f32 -1.442695, %v1662_v44  ;;  %v623_v46 = vmul.f32 1.442695, %v1662_v44  ;;  %s1306_s22 = smul.u32 768, %s2132_s16 }
  0x46   : > { %1367 = vpow2.f32 %v346_v5 }
  0x47   : > { %s1682_s9 = scalar_lea.vmem %s2112_s3, %s1306_s22  ;;  %s1709_s12 = scalar_lea.vmem %s2111_s2, %s1306_s22 }
  0x50   : > { %v1362_v9 = vpop.eup %1361 }
  0x51   : > { %v1364_v12 = vpop.eup %1363  ;;  %v324_v13 = vadd.f32 1.0, %v1362_v9 }
  0x52   : > { %v1366_v14 = vpop.eup %1365  ;;  %v351_v15 = vmul.f32 10.0, %v1364_v12  ;;  %v379_v16 = vmul.f32 13.0, %v1364_v12 }
  0x53   : > { %v1368_v17 = vpop.eup %1367  ;;  %1369 = vrcp.f32 %v324_v13  ;;  %v323_v18 = vadd.f32 1.0, %v1366_v14 }
  0x54   : > { %v350_v20 = vmul.f32 10.0, %v1368_v17  ;;  %v378_v21 = vmul.f32 13.0, %v1368_v17 }
  0x55   : > { %1371 = vrcp.f32 %v323_v18 }
  0x56   : > { %v354_v22 = vcombine.low %v350_v20, %v351_v15  ;;  %v382_v23 = vcombine.low %v378_v21, %v379_v16  ;;  %1373 = vpow2.f32 %v1199_v41 }
  0x57   : > { %1375 = vpow2.f32 %v621_v42 }
  0x58   : > { %v361_v24 = vrot.slane %v354_v22, %v1638_v19  ;;  %v389_v25 = vrot.slane %v382_v23, %v1638_v19  ;;  %1377 = vpow2.f32 %v1200_v45 }
  0x59   : > { %1379 = vpow2.f32 %v623_v46 }
  0x5a   : > { %v368_v26 = vrot.slane %v361_v24, %v1638_v19  ;;  %v390_v27 = vcombine.high %v389_v25, %v389_v25  ;;  %v1719_v25 = vld [vmem:[%s1622_s10 + $0x20] sm:$0xff] }
  0x5c   : > { %v369_v30 = vcombine.high %v368_v26, %v368_v26  ;;  %v397_v31 = vrot.slane %v390_v27, %v1638_v19  ;;  %v1722_v26 = vld [vmem:[%s1622_s10 + $0x28] sm:$0xff]  ;;  %v1267_v27 = vmul.f32 -1.442695, %v1719_v25 }
  0x5e   : > { %376 = vst.msk [vmem:[#allocation2 + $0x2] ss:$8 sm:$0x3] %vm1643_vm0, %v369_v30  ;;  %v398_v33 = vcombine.high %v397_v31, %v397_v31  ;;  %v891_v30 = vmul.f32 1.442695, %v1719_v25 }
  0x5f   : > { %v1268_v31 = vmul.f32 -1.442695, %v1722_v26 }
  0x60   : > { %v1370_v34 = vpop.eup %1369  ;;  %401 = vst.msk [vmem:[#allocation2 + $0x3] ss:$8 sm:$0x3] %vm1643_vm0, %v398_v33 }
  0x61   : > { %v341_v35 = vadd.f32 %v1370_v34, %v1652_v32  ;;  %404 = vst [vmem:[#allocation2 + $0x8] sm:$0xf0] %v1370_v34  ;;  %v893_v34 = vmul.f32 1.442695, %v1722_v26 }
  0x62   : > { %v1372_v36 = vpop.eup %1371 }
  0x63   : > { %v340_v37 = vadd.f32 %v1372_v36, %v1647_v29  ;;  %v343_v38 = vmul.f32 8.0, %v341_v35  ;;  %403 = vst [vmem:[#allocation2] sm:$0xf0] %v1372_v36  ;;  %v1374_v47 = vpop.eup %1373 }
  0x64   : > { %v1376_v48 = vpop.eup %1375  ;;  %v609_v49 = vadd.f32 1.0, %v1374_v47 }
  0x65   : > { %v342_v39 = vmul.f32 8.0, %v340_v37  ;;  %345 = vst [vmem:[#allocation2 + $0x8] sm:$0x3] %v343_v38  ;;  %v1378_v50 = vpop.eup %1377  ;;  %v625_v51 = vmul.f32 16.0, %v1376_v48  ;;  %v648_v52 = vmul.f32 30.0, %v1376_v48 }
  0x66   : > { %1381 = vrcp.f32 %v609_v49  ;;  %v1380_v53 = vpop.eup %1379  ;;  %v610_v54 = vadd.f32 1.0, %v1378_v50 }
  0x67   : > { %344 = vst [vmem:[#allocation2] sm:$0x3] %v342_v39  ;;  %v626_v55 = vmul.f32 16.0, %v1380_v53  ;;  %v649_v56 = vmul.f32 30.0, %v1380_v53 }
  0x68   : > { %1383 = vrcp.f32 %v610_v54 }
  0x69   : > { %v629_v57 = vcombine.low %v625_v51, %v626_v55  ;;  %v652_v58 = vcombine.low %v648_v52, %v649_v56  ;;  %1385 = vpow2.f32 %v1267_v27 }
  0x6a   : > { %1387 = vpow2.f32 %v891_v30 }
  0x6b   : > { %v636_v59 = vrot.slane %v629_v57, %v1638_v19  ;;  %v659_v60 = vrot.slane %v652_v58, %v1638_v19  ;;  %1389 = vpow2.f32 %v1268_v31 }
  0x6c   : > { %1391 = vpow2.f32 %v893_v34 }
  0x6d   : > { %v643_v61 = vrot.slane %v636_v59, %v1638_v19  ;;  %v660_v62 = vcombine.high %v659_v60, %v659_v60 }
  0x6e   : > { %v405_v43 = vld [vmem:[#allocation2] sm:$0xff] }
  0x6f   : > { %407 = vxpose.xlu1.b32.start.end [1/1] (short) %v405_v43, 128  ;;  %v644_v63 = vcombine.high %v643_v61, %v643_v61  ;;  %v667_v0 = vrot.slane %v660_v62, %v1638_v19 }
  0x71   : > { %v668_v2 = vcombine.high %v667_v0, %v667_v0 }
  0x73   : > { %v1382_v3 = vpop.eup %1381 }
  0x74   : > { %v615_v4 = vadd.f32 %v1382_v3, %v1647_v29  ;;  %672 = vst [vmem:[#allocation2] sm:$0xf0] %v1382_v3 }
  0x75   : > { %v1384_v5 = vpop.eup %1383 }
  0x76   : > { %v617_v6 = vmul.f32 8.0, %v615_v4  ;;  %v616_v7 = vadd.f32 %v1384_v5, %v1652_v32  ;;  %v1386_v42 = vpop.eup %1385 }
  0x77   : > { %v879_v45 = vadd.f32 1.0, %v1386_v42 }
  0x78   : > { %619 = vst [vmem:[#allocation2] sm:$0x3] %v617_v6  ;;  %v618_v8 = vmul.f32 8.0, %v616_v7 }
  0x79   : > { %1393 = vrcp.f32 %v879_v45 }
  0x7e   : > { %252 = vxpose.xlu0.b32.start.end [1/1] (short) %v1634_v1, 128  ;;  %v406_v1 = vld [vmem:[#allocation2 + $0x8] sm:$0xff] }
  0x7f   : > { %646 = vst.msk [vmem:[#allocation2 + $0x2] ss:$8 sm:$0x3] %vm1643_vm0, %v644_v63  ;;  %670 = vst.msk [vmem:[#allocation2 + $0x3] ss:$8 sm:$0x3] %vm1643_vm0, %v668_v2 }
  0x80   : > { %673 = vst [vmem:[#allocation2 + $0x8] sm:$0xf0] %v1384_v5  ;;  %620 = vst [vmem:[#allocation2 + $0x8] sm:$0x3] %v618_v8 }
  0x86   : > { %v674_v37 = vld [vmem:[#allocation2] sm:$0xff] }
  0x87   : > { %v675_v3 = vld [vmem:[#allocation2 + $0x8] sm:$0xff] }
  0xac   : > { %439 = vxpose.xlu1.b32.start.end [1/1] (short) %v406_v1, 128 }
  0xbb   : > { %506 = vxpose.xlu0.b32.start.end [1/1] (short) %v1165_v40, 128 }
  0xbd   : > { %v236_v9 = vpop.trf.xlu0 }
  0xbe   : > { %285 = vst.msk [vmem:[%s1682_s9] sm:$0xff] %vm284_vm1, %v236_v9 }
  0xc1   : > { %v237_v10 = vpop.trf.xlu0 }
  0xc2   : > { %286 = vst.msk [vmem:[%s1682_s9 + $0x8] sm:$0xff] %vm284_vm1, %v237_v10 }
  0xc5   : > { %v238_v11 = vpop.trf.xlu0 }
  0xc6   : > { %287 = vst.msk [vmem:[%s1682_s9 + $0x10] sm:$0xff] %vm284_vm1, %v238_v11 }
  0xc9   : > { %v239_v12 = vpop.trf.xlu0 }
  0xca   : > { %288 = vst.msk [vmem:[%s1682_s9 + $0x18] sm:$0xff] %vm284_vm1, %v239_v12 }
  0xcd   : > { %v240_v13 = vpop.trf.xlu0 }
  0xce   : > { %289 = vst.msk [vmem:[%s1682_s9 + $0x20] sm:$0xff] %vm284_vm1, %v240_v13 }
  0xd1   : > { %v241_v14 = vpop.trf.xlu0 }
  0xd2   : > { %290 = vst.msk [vmem:[%s1682_s9 + $0x28] sm:$0xff] %vm284_vm1, %v241_v14 }
  0xd5   : > { %v242_v15 = vpop.trf.xlu0 }
  0xd6   : > { %291 = vst.msk [vmem:[%s1682_s9 + $0x30] sm:$0xff] %vm284_vm1, %v242_v15 }
  0xd9   : > { %v243_v16 = vpop.trf.xlu0 }
  0xda   : > { %292 = vst.msk [vmem:[%s1682_s9 + $0x38] sm:$0xff] %vm284_vm1, %v243_v16 }
  0xdd   : > { %v244_v17 = vpop.trf.xlu0 }
  0xde   : > { %293 = vst.msk [vmem:[%s1682_s9 + $0x40] sm:$0xff] %vm284_vm1, %v244_v17 }
  0xe1   : > { %v245_v18 = vpop.trf.xlu0 }
  0xe2   : > { %294 = vst.msk [vmem:[%s1682_s9 + $0x48] sm:$0xff] %vm284_vm1, %v245_v18 }
  0xe5   : > { %v246_v20 = vpop.trf.xlu0 }
  0xe6   : > { %295 = vst.msk [vmem:[%s1682_s9 + $0x50] sm:$0xff] %vm284_vm1, %v246_v20 }
  0xe9   : > { %538 = vxpose.xlu1.b32.start.end [1/1] (short) %v1662_v44, 128  ;;  %v247_v21 = vpop.trf.xlu0  ;;  %v1388_v44 = vpop.eup %1387 }
  0xea   : > { %296 = vst.msk [vmem:[%s1682_s9 + $0x58] sm:$0xff] %vm284_vm1, %v247_v21  ;;  %v1390_v46 = vpop.eup %1389  ;;  %v895_v48 = vmul.f32 33.0, %v1388_v44  ;;  %v918_v49 = vmul.f32 23.0, %v1388_v44 }
  0xeb   : > { %v423_v22 = vpop.trf.xlu1  ;;  %v1392_v50 = vpop.eup %1391  ;;  %v880_v51 = vadd.f32 1.0, %v1390_v46 }
  0xec   : > { %471 = vst.msk [vmem:[%s1709_s12] sm:$0xff] %vm284_vm1, %v423_v22  ;;  %v896_v53 = vmul.f32 33.0, %v1392_v50  ;;  %v919_v54 = vmul.f32 23.0, %v1392_v50  ;;  %v1394_v6 = vpop.eup %1393 }
  0xed   : > { %v248_v23 = vpop.trf.xlu0  ;;  %1395 = vrcp.f32 %v880_v51  ;;  %942 = vst [vmem:[#allocation2] sm:$0xf0] %v1394_v6 }
  0xee   : > { %297 = vst.msk [vmem:[%s1682_s9 + $0x60] sm:$0xff] %vm284_vm1, %v248_v23  ;;  %v899_v56 = vcombine.low %v895_v48, %v896_v53  ;;  %v922_v57 = vcombine.low %v918_v49, %v919_v54 }
  0xef   : > { %v424_v24 = vpop.trf.xlu1 }
  0xf0   : > { %472 = vst.msk [vmem:[%s1709_s12 + $0x8] sm:$0xff] %vm284_vm1, %v424_v24  ;;  %v906_v59 = vrot.slane %v899_v56, %v1638_v19  ;;  %v929_v60 = vrot.slane %v922_v57, %v1638_v19 }
  0xf1   : > { %v249_v33 = vpop.trf.xlu0 }
  0xf2   : > { %298 = vst.msk [vmem:[%s1682_s9 + $0x68] sm:$0xff] %vm284_vm1, %v249_v33  ;;  %v913_v62 = vrot.slane %v906_v59, %v1638_v19  ;;  %v930_v63 = vcombine.high %v929_v60, %v929_v60 }
  0xf3   : > { %v425_v35 = vpop.trf.xlu1 }
  0xf4   : > { %473 = vst.msk [vmem:[%s1709_s12 + $0x10] sm:$0xff] %vm284_vm1, %v425_v35  ;;  %v914_v1 = vcombine.high %v913_v62, %v913_v62  ;;  %v937_v2 = vrot.slane %v930_v63, %v1638_v19  ;;  %v885_v19 = vadd.f32 %v1394_v6, %v1647_v29 }
  0xf5   : > { %v250_v36 = vpop.trf.xlu0 }
  0xf6   : > { %299 = vst.msk [vmem:[%s1682_s9 + $0x70] sm:$0xff] %vm284_vm1, %v250_v36  ;;  %v938_v5 = vcombine.high %v937_v2, %v937_v2  ;;  %v887_v10 = vmul.f32 8.0, %v885_v19 }
  0xf7   : > { %v426_v38 = vpop.trf.xlu1  ;;  %916 = vst.msk [vmem:[#allocation2 + $0x2] ss:$8 sm:$0x3] %vm1643_vm0, %v914_v1 }
  0xf8   : > { %474 = vst.msk [vmem:[%s1709_s12 + $0x18] sm:$0xff] %vm284_vm1, %v426_v38  ;;  %676 = vxpose.xlu0.b32.start.end [1/1] (short) %v674_v37, 128  ;;  %889 = vst [vmem:[#allocation2] sm:$0x3] %v887_v10 }
  0xf9   : > { %v251_v39 = vpop.trf.xlu0  ;;  %940 = vst.msk [vmem:[#allocation2 + $0x3] ss:$8 sm:$0x3] %vm1643_vm0, %v938_v5 }
  0xfa   : > { %300 = vst.msk [vmem:[%s1682_s9 + $0x78] sm:$0xff] %vm284_vm1, %v251_v39  ;;  %v1396_v8 = vpop.eup %1395 }
  0xfb   : > { %v427_v40 = vpop.trf.xlu1  ;;  %v886_v11 = vadd.f32 %v1396_v8, %v1652_v32  ;;  %943 = vst [vmem:[#allocation2 + $0x8] sm:$0xf0] %v1396_v8 }
  0xfc   : > { %475 = vst.msk [vmem:[%s1709_s12 + $0x20] sm:$0xff] %vm284_vm1, %v427_v40 }
  0xfd   : > { %v268_v41 = vpop.trf.xlu0  ;;  %v888_v29 = vmul.f32 8.0, %v886_v11 }
  0xfe   : > { %301 = vst.msk [vmem:[%s1682_s9 + $0x80] sm:$0xff] %vm284_vm1, %v268_v41 }
  0xff   : > { %v428_v43 = vpop.trf.xlu1  ;;  %890 = vst [vmem:[#allocation2 + $0x8] sm:$0x3] %v888_v29 }
 0x100   : > { %476 = vst.msk [vmem:[%s1709_s12 + $0x28] sm:$0xff] %vm284_vm1, %v428_v43  ;;  %v944_v62 = vld [vmem:[#allocation2] sm:$0xff] }
 0x101   : > { %v269_v47 = vpop.trf.xlu0 }
 0x102   : > { %302 = vst.msk [vmem:[%s1682_s9 + $0x88] sm:$0xff] %vm284_vm1, %v269_v47 }
 0x103   : > { %v429_v52 = vpop.trf.xlu1 }
 0x104   : > { %477 = vst.msk [vmem:[%s1709_s12 + $0x30] sm:$0xff] %vm284_vm1, %v429_v52 }
 0x105   : > { %v270_v55 = vpop.trf.xlu0 }
 0x106   : > { %303 = vst.msk [vmem:[%s1682_s9 + $0x90] sm:$0xff] %vm284_vm1, %v270_v55 }
 0x107   : > { %v430_v58 = vpop.trf.xlu1 }
 0x108   : > { %478 = vst.msk [vmem:[%s1709_s12 + $0x38] sm:$0xff] %vm284_vm1, %v430_v58 }
 0x109   : > { %v271_v61 = vpop.trf.xlu0 }
 0x10a   : > { %304 = vst.msk [vmem:[%s1682_s9 + $0x98] sm:$0xff] %vm284_vm1, %v271_v61 }
 0x10b   : > { %v431_v0 = vpop.trf.xlu1 }
 0x10c   : > { %479 = vst.msk [vmem:[%s1709_s12 + $0x40] sm:$0xff] %vm284_vm1, %v431_v0 }
 0x10d   : > { %v272_v4 = vpop.trf.xlu0 }
 0x10e   : > { %305 = vst.msk [vmem:[%s1682_s9 + $0xa0] sm:$0xff] %vm284_vm1, %v272_v4 }
 0x10f   : > { %v432_v7 = vpop.trf.xlu1 }
 0x110   : > { %480 = vst.msk [vmem:[%s1709_s12 + $0x48] sm:$0xff] %vm284_vm1, %v432_v7 }
 0x111   : > { %v273_v9 = vpop.trf.xlu0 }
 0x112   : > { %306 = vst.msk [vmem:[%s1682_s9 + $0xa8] sm:$0xff] %vm284_vm1, %v273_v9 }
 0x113   : > { %v433_v28 = vpop.trf.xlu1 }
 0x114   : > { %481 = vst.msk [vmem:[%s1709_s12 + $0x50] sm:$0xff] %vm284_vm1, %v433_v28 }
 0x115   : > { %v274_v12 = vpop.trf.xlu0 }
 0x116   : > { %307 = vst.msk [vmem:[%s1682_s9 + $0xb0] sm:$0xff] %vm284_vm1, %v274_v12 }
 0x117   : > { %v434_v13 = vpop.trf.xlu1 }
 0x118   : > { %482 = vst.msk [vmem:[%s1709_s12 + $0x58] sm:$0xff] %vm284_vm1, %v434_v13 }
 0x119   : > { %v275_v14 = vpop.trf.xlu0 }
 0x11a   : > { %308 = vst.msk [vmem:[%s1682_s9 + $0xb8] sm:$0xff] %vm284_vm1, %v275_v14 }
 0x11b   : > { %v435_v32 = vpop.trf.xlu1 }
 0x11c   : > { %483 = vst.msk [vmem:[%s1709_s12 + $0x60] sm:$0xff] %vm284_vm1, %v435_v32 }
 0x11d   : > { %v276_v15 = vpop.trf.xlu0 }
 0x11e   : > { %309 = vst.msk [vmem:[%s1682_s9 + $0xc0] sm:$0xff] %vm284_vm1, %v276_v15 }
 0x11f   : > { %v436_v16 = vpop.trf.xlu1 }
 0x120   : > { %484 = vst.msk [vmem:[%s1709_s12 + $0x68] sm:$0xff] %vm284_vm1, %v436_v16 }
 0x121   : > { %v277_v17 = vpop.trf.xlu0 }
 0x122   : > { %310 = vst.msk [vmem:[%s1682_s9 + $0xc8] sm:$0xff] %vm284_vm1, %v277_v17 }
 0x123   : > { %v437_v18 = vpop.trf.xlu1 }
 0x124   : > { %485 = vst.msk [vmem:[%s1709_s12 + $0x70] sm:$0xff] %vm284_vm1, %v437_v18  ;;  %v945_v18 = vld [vmem:[#allocation2 + $0x8] sm:$0xff] }
 0x125   : > { %v278_v20 = vpop.trf.xlu0 }
 0x126   : > { %708 = vxpose.xlu1.b32.start.end [1/1] (short) %v675_v3, 128  ;;  %311 = vst.msk [vmem:[%s1682_s9 + $0xd0] sm:$0xff] %vm284_vm1, %v278_v20 }
 0x127   : > { %v438_v21 = vpop.trf.xlu1 }
 0x128   : > { %486 = vst.msk [vmem:[%s1709_s12 + $0x78] sm:$0xff] %vm284_vm1, %v438_v21 }
 0x129   : > { %v279_v22 = vpop.trf.xlu0 }
 0x12a   : > { %312 = vst.msk [vmem:[%s1682_s9 + $0xd8] sm:$0xff] %vm284_vm1, %v279_v22 }
 0x12b   : > { %v455_v23 = vpop.trf.xlu1 }
 0x12c   : > { %487 = vst.msk [vmem:[%s1709_s12 + $0x80] sm:$0xff] %vm284_vm1, %v455_v23 }
 0x12d   : > { %v280_v24 = vpop.trf.xlu0 }
 0x12e   : > { %313 = vst.msk [vmem:[%s1682_s9 + $0xe0] sm:$0xff] %vm284_vm1, %v280_v24 }
 0x12f   : > { %v456_v27 = vpop.trf.xlu1 }
 0x130   : > { %488 = vst.msk [vmem:[%s1709_s12 + $0x88] sm:$0xff] %vm284_vm1, %v456_v27 }
 0x131   : > { %v281_v30 = vpop.trf.xlu0 }
 0x132   : > { %314 = vst.msk [vmem:[%s1682_s9 + $0xe8] sm:$0xff] %vm284_vm1, %v281_v30 }
 0x133   : > { %v457_v31 = vpop.trf.xlu1 }
 0x134   : > { %489 = vst.msk [vmem:[%s1709_s12 + $0x90] sm:$0xff] %vm284_vm1, %v457_v31 }
 0x135   : > { %v282_v33 = vpop.trf.xlu0  ;;  %776 = vxpose.xlu0.b32.start.end [1/1] (short) %v1719_v25, 128 }
 0x136   : > { %315 = vst.msk [vmem:[%s1682_s9 + $0xf0] sm:$0xff] %vm284_vm1, %v282_v33 }
 0x137   : > { %v458_v34 = vpop.trf.xlu1 }
 0x138   : > { %490 = vst.msk [vmem:[%s1709_s12 + $0x98] sm:$0xff] %vm284_vm1, %v458_v34 }
 0x139   : > { %v283_v35 = vpop.trf.xlu0 }
 0x13a   : > { %316 = vst.msk [vmem:[%s1682_s9 + $0xf8] sm:$0xff] %vm284_vm1, %v283_v35 }
 0x13b   : > { %v459_v36 = vpop.trf.xlu1 }
 0x13c   : > { %491 = vst.msk [vmem:[%s1709_s12 + $0xa0] sm:$0xff] %vm284_vm1, %v459_v36 }
 0x13d   : > { %v522_v37 = vpop.trf.xlu0 }
 0x13e   : > { %1167 = vst.msk [vmem:[%s1682_s9 + $0x100] sm:$0xff] %vm284_vm1, %v522_v37 }
 0x13f   : > { %v460_v25 = vpop.trf.xlu1 }
 0x140   : > { %492 = vst.msk [vmem:[%s1709_s12 + $0xa8] sm:$0xff] %vm284_vm1, %v460_v25 }
 0x141   : > { %v523_v38 = vpop.trf.xlu0 }
 0x142   : > { %1168 = vst.msk [vmem:[%s1682_s9 + $0x108] sm:$0xff] %vm284_vm1, %v523_v38 }
 0x143   : > { %v461_v39 = vpop.trf.xlu1 }
 0x144   : > { %493 = vst.msk [vmem:[%s1709_s12 + $0xb0] sm:$0xff] %vm284_vm1, %v461_v39 }
 0x145   : > { %v524_v40 = vpop.trf.xlu0 }
 0x146   : > { %1169 = vst.msk [vmem:[%s1682_s9 + $0x110] sm:$0xff] %vm284_vm1, %v524_v40 }
 0x147   : > { %v462_v41 = vpop.trf.xlu1 }
 0x148   : > { %494 = vst.msk [vmem:[%s1709_s12 + $0xb8] sm:$0xff] %vm284_vm1, %v462_v41 }
 0x149   : > { %v525_v42 = vpop.trf.xlu0 }
 0x14a   : > { %1170 = vst.msk [vmem:[%s1682_s9 + $0x118] sm:$0xff] %vm284_vm1, %v525_v42 }
 0x14b   : > { %v463_v43 = vpop.trf.xlu1 }
 0x14c   : > { %495 = vst.msk [vmem:[%s1709_s12 + $0xc0] sm:$0xff] %vm284_vm1, %v463_v43 }
 0x14d   : > { %v526_v44 = vpop.trf.xlu0 }
 0x14e   : > { %1171 = vst.msk [vmem:[%s1682_s9 + $0x120] sm:$0xff] %vm284_vm1, %v526_v44 }
 0x14f   : > { %v464_v45 = vpop.trf.xlu1 }
 0x150   : > { %496 = vst.msk [vmem:[%s1709_s12 + $0xc8] sm:$0xff] %vm284_vm1, %v464_v45 }
 0x151   : > { %v527_v46 = vpop.trf.xlu0 }
 0x152   : > { %1172 = vst.msk [vmem:[%s1682_s9 + $0x128] sm:$0xff] %vm284_vm1, %v527_v46 }
 0x153   : > { %v465_v47 = vpop.trf.xlu1 }
 0x154   : > { %497 = vst.msk [vmem:[%s1709_s12 + $0xd0] sm:$0xff] %vm284_vm1, %v465_v47 }
 0x155   : > { %v528_v48 = vpop.trf.xlu0 }
 0x156   : > { %1173 = vst.msk [vmem:[%s1682_s9 + $0x130] sm:$0xff] %vm284_vm1, %v528_v48 }
 0x157   : > { %v466_v49 = vpop.trf.xlu1 }
 0x158   : > { %498 = vst.msk [vmem:[%s1709_s12 + $0xd8] sm:$0xff] %vm284_vm1, %v466_v49 }
 0x159   : > { %v529_v50 = vpop.trf.xlu0 }
 0x15a   : > { %1174 = vst.msk [vmem:[%s1682_s9 + $0x138] sm:$0xff] %vm284_vm1, %v529_v50 }
 0x15b   : > { %v467_v51 = vpop.trf.xlu1 }
 0x15c   : > { %499 = vst.msk [vmem:[%s1709_s12 + $0xe0] sm:$0xff] %vm284_vm1, %v467_v51 }
 0x15d   : > { %v530_v52 = vpop.trf.xlu0 }
 0x15e   : > { %1175 = vst.msk [vmem:[%s1682_s9 + $0x140] sm:$0xff] %vm284_vm1, %v530_v52 }
 0x15f   : > { %v468_v53 = vpop.trf.xlu1 }
 0x160   : > { %500 = vst.msk [vmem:[%s1709_s12 + $0xe8] sm:$0xff] %vm284_vm1, %v468_v53 }
 0x161   : > { %v531_v54 = vpop.trf.xlu0 }
 0x162   : > { %1176 = vst.msk [vmem:[%s1682_s9 + $0x148] sm:$0xff] %vm284_vm1, %v531_v54 }
 0x163   : > { %v469_v55 = vpop.trf.xlu1  ;;  %808 = vxpose.xlu1.b32.start.end [1/1] (short) %v1722_v26, 128 }
 0x164   : > { %501 = vst.msk [vmem:[%s1709_s12 + $0xf0] sm:$0xff] %vm284_vm1, %v469_v55 }
 0x165   : > { %v532_v56 = vpop.trf.xlu0 }
 0x166   : > { %1177 = vst.msk [vmem:[%s1682_s9 + $0x150] sm:$0xff] %vm284_vm1, %v532_v56 }
 0x167   : > { %v470_v57 = vpop.trf.xlu1 }
 0x168   : > { %502 = vst.msk [vmem:[%s1709_s12 + $0xf8] sm:$0xff] %vm284_vm1, %v470_v57 }
 0x169   : > { %v533_v58 = vpop.trf.xlu0 }
 0x16a   : > { %1178 = vst.msk [vmem:[%s1682_s9 + $0x158] sm:$0xff] %vm284_vm1, %v533_v58 }
 0x16b   : > { %v554_v59 = vpop.trf.xlu1 }
 0x16c   : > { %1183 = vst.msk [vmem:[%s1682_s9 + $0x180] sm:$0xff] %vm284_vm1, %v554_v59 }
 0x16d   : > { %v534_v60 = vpop.trf.xlu0 }
 0x16e   : > { %1179 = vst.msk [vmem:[%s1682_s9 + $0x160] sm:$0xff] %vm284_vm1, %v534_v60 }
 0x16f   : > { %v555_v26 = vpop.trf.xlu1 }
 0x170   : > { %1184 = vst.msk [vmem:[%s1682_s9 + $0x188] sm:$0xff] %vm284_vm1, %v555_v26 }
 0x171   : > { %v535_v61 = vpop.trf.xlu0 }
 0x172   : > { %1180 = vst.msk [vmem:[%s1682_s9 + $0x168] sm:$0xff] %vm284_vm1, %v535_v61 }
 0x173   : > { %v556_v63 = vpop.trf.xlu1 }
 0x174   : > { %1185 = vst.msk [vmem:[%s1682_s9 + $0x190] sm:$0xff] %vm284_vm1, %v556_v63 }
 0x175   : > { %v536_v0 = vpop.trf.xlu0  ;;  %946 = vxpose.xlu0.b32.start.end [1/1] (short) %v944_v62, 128 }
 0x176   : > { %1181 = vst.msk [vmem:[%s1682_s9 + $0x170] sm:$0xff] %vm284_vm1, %v536_v0 }
 0x177   : > { %v557_v1 = vpop.trf.xlu1 }
 0x178   : > { %1186 = vst.msk [vmem:[%s1682_s9 + $0x198] sm:$0xff] %vm284_vm1, %v557_v1 }
 0x179   : > { %v537_v2 = vpop.trf.xlu0 }
 0x17a   : > { %1182 = vst.msk [vmem:[%s1682_s9 + $0x178] sm:$0xff] %vm284_vm1, %v537_v2 }
 0x17b   : > { %v558_v3 = vpop.trf.xlu1 }
 0x17c   : > { %1187 = vst.msk [vmem:[%s1682_s9 + $0x1a0] sm:$0xff] %vm284_vm1, %v558_v3 }
 0x17d   : > { %v692_v4 = vpop.trf.xlu0 }
 0x17e   : > { %1201 = vst.msk [vmem:[%s1709_s12 + $0x100] sm:$0xff] %vm284_vm1, %v692_v4 }
 0x17f   : > { %v559_v5 = vpop.trf.xlu1 }
 0x180   : > { %1188 = vst.msk [vmem:[%s1682_s9 + $0x1a8] sm:$0xff] %vm284_vm1, %v559_v5 }
 0x181   : > { %v693_v6 = vpop.trf.xlu0 }
 0x182   : > { %1202 = vst.msk [vmem:[%s1709_s12 + $0x108] sm:$0xff] %vm284_vm1, %v693_v6 }
 0x183   : > { %v560_v7 = vpop.trf.xlu1 }
 0x184   : > { %1189 = vst.msk [vmem:[%s1682_s9 + $0x1b0] sm:$0xff] %vm284_vm1, %v560_v7 }
 0x185   : > { %v694_v19 = vpop.trf.xlu0 }
 0x186   : > { %1203 = vst.msk [vmem:[%s1709_s12 + $0x110] sm:$0xff] %vm284_vm1, %v694_v19 }
 0x187   : > { %v561_v8 = vpop.trf.xlu1 }
 0x188   : > { %1190 = vst.msk [vmem:[%s1682_s9 + $0x1b8] sm:$0xff] %vm284_vm1, %v561_v8 }
 0x189   : > { %v695_v9 = vpop.trf.xlu0 }
 0x18a   : > { %1204 = vst.msk [vmem:[%s1709_s12 + $0x118] sm:$0xff] %vm284_vm1, %v695_v9 }
 0x18b   : > { %v562_v10 = vpop.trf.xlu1 }
 0x18c   : > { %1191 = vst.msk [vmem:[%s1682_s9 + $0x1c0] sm:$0xff] %vm284_vm1, %v562_v10 }
 0x18d   : > { %v696_v11 = vpop.trf.xlu0 }
 0x18e   : > { %1205 = vst.msk [vmem:[%s1709_s12 + $0x120] sm:$0xff] %vm284_vm1, %v696_v11 }
 0x18f   : > { %v563_v28 = vpop.trf.xlu1 }
 0x190   : > { %1192 = vst.msk [vmem:[%s1682_s9 + $0x1c8] sm:$0xff] %vm284_vm1, %v563_v28 }
 0x191   : > { %v697_v29 = vpop.trf.xlu0 }
 0x192   : > { %1206 = vst.msk [vmem:[%s1709_s12 + $0x128] sm:$0xff] %vm284_vm1, %v697_v29 }
 0x193   : > { %v564_v12 = vpop.trf.xlu1 }
 0x194   : > { %1193 = vst.msk [vmem:[%s1682_s9 + $0x1d0] sm:$0xff] %vm284_vm1, %v564_v12 }
 0x195   : > { %v698_v13 = vpop.trf.xlu0 }
 0x196   : > { %1207 = vst.msk [vmem:[%s1709_s12 + $0x130] sm:$0xff] %vm284_vm1, %v698_v13 }
 0x197   : > { %v565_v14 = vpop.trf.xlu1 }
 0x198   : > { %1194 = vst.msk [vmem:[%s1682_s9 + $0x1d8] sm:$0xff] %vm284_vm1, %v565_v14 }
 0x199   : > { %v699_v32 = vpop.trf.xlu0 }
 0x19a   : > { %1208 = vst.msk [vmem:[%s1709_s12 + $0x138] sm:$0xff] %vm284_vm1, %v699_v32 }
 0x19b   : > { %v566_v15 = vpop.trf.xlu1 }
 0x19c   : > { %1195 = vst.msk [vmem:[%s1682_s9 + $0x1e0] sm:$0xff] %vm284_vm1, %v566_v15 }
 0x19d   : > { %v700_v16 = vpop.trf.xlu0 }
 0x19e   : > { %1209 = vst.msk [vmem:[%s1709_s12 + $0x140] sm:$0xff] %vm284_vm1, %v700_v16 }
 0x19f   : > { %v567_v17 = vpop.trf.xlu1 }
 0x1a0   : > { %1196 = vst.msk [vmem:[%s1682_s9 + $0x1e8] sm:$0xff] %vm284_vm1, %v567_v17 }
 0x1a1   : > { %v701_v20 = vpop.trf.xlu0 }
 0x1a2   : > { %1210 = vst.msk [vmem:[%s1709_s12 + $0x148] sm:$0xff] %vm284_vm1, %v701_v20 }
 0x1a3   : > { %v568_v21 = vpop.trf.xlu1  ;;  %978 = vxpose.xlu1.b32.start.end [1/1] (short) %v945_v18, 128 }
 0x1a4   : > { %1197 = vst.msk [vmem:[%s1682_s9 + $0x1f0] sm:$0xff] %vm284_vm1, %v568_v21 }
 0x1a5   : > { %v702_v22 = vpop.trf.xlu0 }
 0x1a6   : > { %1211 = vst.msk [vmem:[%s1709_s12 + $0x150] sm:$0xff] %vm284_vm1, %v702_v22 }
 0x1a7   : > { %v569_v23 = vpop.trf.xlu1 }
 0x1a8   : > { %1198 = vst.msk [vmem:[%s1682_s9 + $0x1f8] sm:$0xff] %vm284_vm1, %v569_v23 }
 0x1a9   : > { %v703_v24 = vpop.trf.xlu0 }
 0x1aa   : > { %1212 = vst.msk [vmem:[%s1709_s12 + $0x158] sm:$0xff] %vm284_vm1, %v703_v24 }
 0x1ab   : > { %v724_v27 = vpop.trf.xlu1 }
 0x1ac   : > { %1217 = vst.msk [vmem:[%s1709_s12 + $0x180] sm:$0xff] %vm284_vm1, %v724_v27 }
 0x1ad   : > { %v704_v30 = vpop.trf.xlu0 }
 0x1ae   : > { %1213 = vst.msk [vmem:[%s1709_s12 + $0x160] sm:$0xff] %vm284_vm1, %v704_v30 }
 0x1af   : > { %v725_v31 = vpop.trf.xlu1 }
 0x1b0   : > { %1218 = vst.msk [vmem:[%s1709_s12 + $0x188] sm:$0xff] %vm284_vm1, %v725_v31 }
 0x1b1   : > { %v705_v33 = vpop.trf.xlu0 }
 0x1b2   : > { %1214 = vst.msk [vmem:[%s1709_s12 + $0x168] sm:$0xff] %vm284_vm1, %v705_v33 }
 0x1b3   : > { %v726_v34 = vpop.trf.xlu1 }
 0x1b4   : > { %1219 = vst.msk [vmem:[%s1709_s12 + $0x190] sm:$0xff] %vm284_vm1, %v726_v34 }
 0x1b5   : > { %v706_v35 = vpop.trf.xlu0 }
 0x1b6   : > { %1215 = vst.msk [vmem:[%s1709_s12 + $0x170] sm:$0xff] %vm284_vm1, %v706_v35 }
 0x1b7   : > { %v727_v36 = vpop.trf.xlu1 }
 0x1b8   : > { %1220 = vst.msk [vmem:[%s1709_s12 + $0x198] sm:$0xff] %vm284_vm1, %v727_v36 }
 0x1b9   : > { %v707_v37 = vpop.trf.xlu0 }
 0x1ba   : > { %1216 = vst.msk [vmem:[%s1709_s12 + $0x178] sm:$0xff] %vm284_vm1, %v707_v37 }
 0x1bb   : > { %v728_v25 = vpop.trf.xlu1 }
 0x1bc   : > { %1221 = vst.msk [vmem:[%s1709_s12 + $0x1a0] sm:$0xff] %vm284_vm1, %v728_v25 }
 0x1bd   : > { %v792_v38 = vpop.trf.xlu0 }
 0x1be   : > { %1235 = vst.msk [vmem:[%s1682_s9 + $0x200] sm:$0xff] %vm284_vm1, %v792_v38 }
 0x1bf   : > { %v729_v39 = vpop.trf.xlu1 }
 0x1c0   : > { %1222 = vst.msk [vmem:[%s1709_s12 + $0x1a8] sm:$0xff] %vm284_vm1, %v729_v39 }
 0x1c1   : > { %v793_v40 = vpop.trf.xlu0 }
 0x1c2   : > { %1236 = vst.msk [vmem:[%s1682_s9 + $0x208] sm:$0xff] %vm284_vm1, %v793_v40 }
 0x1c3   : > { %v730_v41 = vpop.trf.xlu1 }
 0x1c4   : > { %1223 = vst.msk [vmem:[%s1709_s12 + $0x1b0] sm:$0xff] %vm284_vm1, %v730_v41 }
 0x1c5   : > { %v794_v42 = vpop.trf.xlu0 }
 0x1c6   : > { %1237 = vst.msk [vmem:[%s1682_s9 + $0x210] sm:$0xff] %vm284_vm1, %v794_v42 }
 0x1c7   : > { %v731_v43 = vpop.trf.xlu1 }
 0x1c8   : > { %1224 = vst.msk [vmem:[%s1709_s12 + $0x1b8] sm:$0xff] %vm284_vm1, %v731_v43 }
 0x1c9   : > { %v795_v44 = vpop.trf.xlu0 }
 0x1ca   : > { %1238 = vst.msk [vmem:[%s1682_s9 + $0x218] sm:$0xff] %vm284_vm1, %v795_v44 }
 0x1cb   : > { %v732_v45 = vpop.trf.xlu1 }
 0x1cc   : > { %1225 = vst.msk [vmem:[%s1709_s12 + $0x1c0] sm:$0xff] %vm284_vm1, %v732_v45 }
 0x1cd   : > { %v796_v46 = vpop.trf.xlu0 }
 0x1ce   : > { %1239 = vst.msk [vmem:[%s1682_s9 + $0x220] sm:$0xff] %vm284_vm1, %v796_v46 }
 0x1cf   : > { %v733_v47 = vpop.trf.xlu1 }
 0x1d0   : > { %1226 = vst.msk [vmem:[%s1709_s12 + $0x1c8] sm:$0xff] %vm284_vm1, %v733_v47 }
 0x1d1   : > { %v797_v48 = vpop.trf.xlu0 }
 0x1d2   : > { %1240 = vst.msk [vmem:[%s1682_s9 + $0x228] sm:$0xff] %vm284_vm1, %v797_v48 }
 0x1d3   : > { %v734_v49 = vpop.trf.xlu1 }
 0x1d4   : > { %1227 = vst.msk [vmem:[%s1709_s12 + $0x1d0] sm:$0xff] %vm284_vm1, %v734_v49 }
 0x1d5   : > { %v798_v50 = vpop.trf.xlu0 }
 0x1d6   : > { %1241 = vst.msk [vmem:[%s1682_s9 + $0x230] sm:$0xff] %vm284_vm1, %v798_v50 }
 0x1d7   : > { %v735_v51 = vpop.trf.xlu1 }
 0x1d8   : > { %1228 = vst.msk [vmem:[%s1709_s12 + $0x1d8] sm:$0xff] %vm284_vm1, %v735_v51 }
 0x1d9   : > { %v799_v52 = vpop.trf.xlu0 }
 0x1da   : > { %1242 = vst.msk [vmem:[%s1682_s9 + $0x238] sm:$0xff] %vm284_vm1, %v799_v52 }
 0x1db   : > { %v736_v53 = vpop.trf.xlu1 }
 0x1dc   : > { %1229 = vst.msk [vmem:[%s1709_s12 + $0x1e0] sm:$0xff] %vm284_vm1, %v736_v53 }
 0x1dd   : > { %v800_v54 = vpop.trf.xlu0 }
 0x1de   : > { %1243 = vst.msk [vmem:[%s1682_s9 + $0x240] sm:$0xff] %vm284_vm1, %v800_v54 }
 0x1df   : > { %v737_v55 = vpop.trf.xlu1 }
 0x1e0   : > { %1230 = vst.msk [vmem:[%s1709_s12 + $0x1e8] sm:$0xff] %vm284_vm1, %v737_v55 }
 0x1e1   : > { %v801_v56 = vpop.trf.xlu0 }
 0x1e2   : > { %1244 = vst.msk [vmem:[%s1682_s9 + $0x248] sm:$0xff] %vm284_vm1, %v801_v56 }
 0x1e3   : > { %v738_v57 = vpop.trf.xlu1 }
 0x1e4   : > { %1231 = vst.msk [vmem:[%s1709_s12 + $0x1f0] sm:$0xff] %vm284_vm1, %v738_v57 }
 0x1e5   : > { %v802_v58 = vpop.trf.xlu0 }
 0x1e6   : > { %1245 = vst.msk [vmem:[%s1682_s9 + $0x250] sm:$0xff] %vm284_vm1, %v802_v58 }
 0x1e7   : > { %v739_v59 = vpop.trf.xlu1 }
 0x1e8   : > { %1232 = vst.msk [vmem:[%s1709_s12 + $0x1f8] sm:$0xff] %vm284_vm1, %v739_v59 }
 0x1e9   : > { %v803_v60 = vpop.trf.xlu0 }
 0x1ea   : > { %1246 = vst.msk [vmem:[%s1682_s9 + $0x258] sm:$0xff] %vm284_vm1, %v803_v60 }
 0x1eb   : > { %v824_v26 = vpop.trf.xlu1 }
 0x1ec   : > { %1251 = vst.msk [vmem:[%s1682_s9 + $0x280] sm:$0xff] %vm284_vm1, %v824_v26 }
 0x1ed   : > { %v804_v61 = vpop.trf.xlu0 }
 0x1ee   : > { %1247 = vst.msk [vmem:[%s1682_s9 + $0x260] sm:$0xff] %vm284_vm1, %v804_v61 }
 0x1ef   : > { %v825_v62 = vpop.trf.xlu1 }
 0x1f0   : > { %1252 = vst.msk [vmem:[%s1682_s9 + $0x288] sm:$0xff] %vm284_vm1, %v825_v62 }
 0x1f1   : > { %v805_v63 = vpop.trf.xlu0 }
 0x1f2   : > { %1248 = vst.msk [vmem:[%s1682_s9 + $0x268] sm:$0xff] %vm284_vm1, %v805_v63 }
 0x1f3   : > { %v826_v0 = vpop.trf.xlu1 }
 0x1f4   : > { %1253 = vst.msk [vmem:[%s1682_s9 + $0x290] sm:$0xff] %vm284_vm1, %v826_v0 }
 0x1f5   : > { %v806_v1 = vpop.trf.xlu0 }
 0x1f6   : > { %1249 = vst.msk [vmem:[%s1682_s9 + $0x270] sm:$0xff] %vm284_vm1, %v806_v1 }
 0x1f7   : > { %v827_v2 = vpop.trf.xlu1 }
 0x1f8   : > { %1254 = vst.msk [vmem:[%s1682_s9 + $0x298] sm:$0xff] %vm284_vm1, %v827_v2 }
 0x1f9   : > { %v807_v3 = vpop.trf.xlu0 }
 0x1fa   : > { %1250 = vst.msk [vmem:[%s1682_s9 + $0x278] sm:$0xff] %vm284_vm1, %v807_v3 }
 0x1fb   : > { %v828_v4 = vpop.trf.xlu1 }
 0x1fc   : > { %1255 = vst.msk [vmem:[%s1682_s9 + $0x2a0] sm:$0xff] %vm284_vm1, %v828_v4 }
 0x1fd   : > { %v962_v5 = vpop.trf.xlu0 }
 0x1fe   : > { %1269 = vst.msk [vmem:[%s1709_s12 + $0x200] sm:$0xff] %vm284_vm1, %v962_v5 }
 0x1ff   : > { %v829_v6 = vpop.trf.xlu1 }
 0x200   : > { %1256 = vst.msk [vmem:[%s1682_s9 + $0x2a8] sm:$0xff] %vm284_vm1, %v829_v6 }
 0x201   : > { %v963_v7 = vpop.trf.xlu0 }
 0x202   : > { %1270 = vst.msk [vmem:[%s1709_s12 + $0x208] sm:$0xff] %vm284_vm1, %v963_v7 }
 0x203   : > { %v830_v19 = vpop.trf.xlu1 }
 0x204   : > { %1257 = vst.msk [vmem:[%s1682_s9 + $0x2b0] sm:$0xff] %vm284_vm1, %v830_v19 }
 0x205   : > { %v964_v8 = vpop.trf.xlu0 }
 0x206   : > { %1271 = vst.msk [vmem:[%s1709_s12 + $0x210] sm:$0xff] %vm284_vm1, %v964_v8 }
 0x207   : > { %v831_v9 = vpop.trf.xlu1 }
 0x208   : > { %1258 = vst.msk [vmem:[%s1682_s9 + $0x2b8] sm:$0xff] %vm284_vm1, %v831_v9 }
 0x209   : > { %v965_v10 = vpop.trf.xlu0 }
 0x20a   : > { %1272 = vst.msk [vmem:[%s1709_s12 + $0x218] sm:$0xff] %vm284_vm1, %v965_v10 }
 0x20b   : > { %v832_v11 = vpop.trf.xlu1 }
 0x20c   : > { %1259 = vst.msk [vmem:[%s1682_s9 + $0x2c0] sm:$0xff] %vm284_vm1, %v832_v11 }
 0x20d   : > { %v966_v28 = vpop.trf.xlu0 }
 0x20e   : > { %1273 = vst.msk [vmem:[%s1709_s12 + $0x220] sm:$0xff] %vm284_vm1, %v966_v28 }
 0x20f   : > { %v833_v29 = vpop.trf.xlu1 }
 0x210   : > { %1260 = vst.msk [vmem:[%s1682_s9 + $0x2c8] sm:$0xff] %vm284_vm1, %v833_v29 }
 0x211   : > { %v967_v12 = vpop.trf.xlu0 }
 0x212   : > { %1274 = vst.msk [vmem:[%s1709_s12 + $0x228] sm:$0xff] %vm284_vm1, %v967_v12 }
 0x213   : > { %v834_v13 = vpop.trf.xlu1 }
 0x214   : > { %1261 = vst.msk [vmem:[%s1682_s9 + $0x2d0] sm:$0xff] %vm284_vm1, %v834_v13 }
 0x215   : > { %v968_v14 = vpop.trf.xlu0 }
 0x216   : > { %1275 = vst.msk [vmem:[%s1709_s12 + $0x230] sm:$0xff] %vm284_vm1, %v968_v14 }
 0x217   : > { %v835_v32 = vpop.trf.xlu1 }
 0x218   : > { %1262 = vst.msk [vmem:[%s1682_s9 + $0x2d8] sm:$0xff] %vm284_vm1, %v835_v32 }
 0x219   : > { %v969_v15 = vpop.trf.xlu0 }
 0x21a   : > { %1276 = vst.msk [vmem:[%s1709_s12 + $0x238] sm:$0xff] %vm284_vm1, %v969_v15 }
 0x21b   : > { %v836_v16 = vpop.trf.xlu1 }
 0x21c   : > { %1263 = vst.msk [vmem:[%s1682_s9 + $0x2e0] sm:$0xff] %vm284_vm1, %v836_v16 }
 0x21d   : > { %v970_v17 = vpop.trf.xlu0 }
 0x21e   : > { %1277 = vst.msk [vmem:[%s1709_s12 + $0x240] sm:$0xff] %vm284_vm1, %v970_v17 }
 0x21f   : > { %v837_v18 = vpop.trf.xlu1 }
 0x220   : > { %1264 = vst.msk [vmem:[%s1682_s9 + $0x2e8] sm:$0xff] %vm284_vm1, %v837_v18 }
 0x221   : > { %v971_v20 = vpop.trf.xlu0 }
 0x222   : > { %1278 = vst.msk [vmem:[%s1709_s12 + $0x248] sm:$0xff] %vm284_vm1, %v971_v20 }
 0x223   : > { %v838_v21 = vpop.trf.xlu1 }
 0x224   : > { %1265 = vst.msk [vmem:[%s1682_s9 + $0x2f0] sm:$0xff] %vm284_vm1, %v838_v21 }
 0x225   : > { %v972_v22 = vpop.trf.xlu0 }
 0x226   : > { %1279 = vst.msk [vmem:[%s1709_s12 + $0x250] sm:$0xff] %vm284_vm1, %v972_v22 }
 0x227   : > { %v839_v23 = vpop.trf.xlu1 }
 0x228   : > { %1266 = vst.msk [vmem:[%s1682_s9 + $0x2f8] sm:$0xff] %vm284_vm1, %v839_v23 }
 0x229   : > { %v973_v24 = vpop.trf.xlu0 }
 0x22a   : > { %1280 = vst.msk [vmem:[%s1709_s12 + $0x258] sm:$0xff] %vm284_vm1, %v973_v24 }
 0x22b   : > { %v994_v27 = vpop.trf.xlu1 }
 0x22c   : > { %1285 = vst.msk [vmem:[%s1709_s12 + $0x280] sm:$0xff] %vm284_vm1, %v994_v27 }
 0x22d   : > { %v974_v30 = vpop.trf.xlu0 }
 0x22e   : > { %1281 = vst.msk [vmem:[%s1709_s12 + $0x260] sm:$0xff] %vm284_vm1, %v974_v30 }
 0x22f   : > { %v995_v31 = vpop.trf.xlu1 }
 0x230   : > { %1286 = vst.msk [vmem:[%s1709_s12 + $0x288] sm:$0xff] %vm284_vm1, %v995_v31 }
 0x231   : > { %v975_v33 = vpop.trf.xlu0 }
 0x232   : > { %1282 = vst.msk [vmem:[%s1709_s12 + $0x268] sm:$0xff] %vm284_vm1, %v975_v33 }
 0x233   : > { %v996_v34 = vpop.trf.xlu1 }
 0x234   : > { %1287 = vst.msk [vmem:[%s1709_s12 + $0x290] sm:$0xff] %vm284_vm1, %v996_v34 }
 0x235   : > { %v976_v35 = vpop.trf.xlu0 }
 0x236   : > { %1283 = vst.msk [vmem:[%s1709_s12 + $0x270] sm:$0xff] %vm284_vm1, %v976_v35 }
 0x237   : > { %v997_v36 = vpop.trf.xlu1 }
 0x238   : > { %1288 = vst.msk [vmem:[%s1709_s12 + $0x298] sm:$0xff] %vm284_vm1, %v997_v36 }
 0x239   : > { %v977_v37 = vpop.trf.xlu0 }
 0x23a   : > { %1284 = vst.msk [vmem:[%s1709_s12 + $0x278] sm:$0xff] %vm284_vm1, %v977_v37 }
 0x23b   : > { %v998_v25 = vpop.trf.xlu1 }
 0x23c   : > { %1289 = vst.msk [vmem:[%s1709_s12 + $0x2a0] sm:$0xff] %vm284_vm1, %v998_v25 }
 0x23f   : > { %v999_v38 = vpop.trf.xlu1 }
 0x240   : > { %1290 = vst.msk [vmem:[%s1709_s12 + $0x2a8] sm:$0xff] %vm284_vm1, %v999_v38 }
 0x243   : > { %v1000_v39 = vpop.trf.xlu1 }
 0x244   : > { %1291 = vst.msk [vmem:[%s1709_s12 + $0x2b0] sm:$0xff] %vm284_vm1, %v1000_v39 }
 0x247   : > { %v1001_v40 = vpop.trf.xlu1 }
 0x248   : > { %1292 = vst.msk [vmem:[%s1709_s12 + $0x2b8] sm:$0xff] %vm284_vm1, %v1001_v40 }
 0x24b   : > { %v1002_v41 = vpop.trf.xlu1 }
 0x24c   : > { %1293 = vst.msk [vmem:[%s1709_s12 + $0x2c0] sm:$0xff] %vm284_vm1, %v1002_v41 }
 0x24f   : > { %v1003_v42 = vpop.trf.xlu1 }
 0x250   : > { %1294 = vst.msk [vmem:[%s1709_s12 + $0x2c8] sm:$0xff] %vm284_vm1, %v1003_v42 }
 0x253   : > { %v1004_v43 = vpop.trf.xlu1 }
 0x254   : > { %1295 = vst.msk [vmem:[%s1709_s12 + $0x2d0] sm:$0xff] %vm284_vm1, %v1004_v43 }
 0x257   : > { %v1005_v44 = vpop.trf.xlu1 }
 0x258   : > { %1296 = vst.msk [vmem:[%s1709_s12 + $0x2d8] sm:$0xff] %vm284_vm1, %v1005_v44 }
 0x25b   : > { %v1006_v45 = vpop.trf.xlu1 }
 0x25c   : > { %1297 = vst.msk [vmem:[%s1709_s12 + $0x2e0] sm:$0xff] %vm284_vm1, %v1006_v45 }
 0x25f   : > { %v1007_v46 = vpop.trf.xlu1 }
 0x260   : > { %1298 = vst.msk [vmem:[%s1709_s12 + $0x2e8] sm:$0xff] %vm284_vm1, %v1007_v46 }
 0x263   : > { %v1008_v47 = vpop.trf.xlu1 }
 0x264   : > { %1299 = vst.msk [vmem:[%s1709_s12 + $0x2f0] sm:$0xff] %vm284_vm1, %v1008_v47 }
 0x267   : > { %v1009_v48 = vpop.trf.xlu1 }
 0x268   : > { %1300 = vst.msk [vmem:[%s1709_s12 + $0x2f8] sm:$0xff] %vm284_vm1, %v1009_v48 }
 0x269 PF: > { %p15_p0 = scmp.ge.s32.totalorder %s1538_s17, 4   ;;  %s2127_s12 = smov %s1481_s13 }
 0x26a   : > { %s2128_s13 = smov %s1485_s14  ;;  %s2129_s14 = smov %s1548_s20 }
 0x26b   : > { %s2130_s15 = smov %s1538_s17  ;;  %17 = sbr.rel (!%p15_p0) target bundleno = 4 (0x4), region = 92 }
 0x270   :  { %1080 = vsyncpa [#allocation4], 1 }
 0x271   :  { %1082 = vsyncpa [#allocation4 + $0x1], 1 }
 0x272   :  { %1083 = vsyncpa [#allocation6], 1 }

</bundles_post_ra>
